<compile_context>
chip_gen: v6e
topology: v6e:2x2x1
jax: 0.10.0
libtpu: 0.0.40
codegen_flags: <defaults>
</compile_context>

<pallas_src>
import jax
import jax.numpy as jnp
from jax.experimental import pallas as pl
from jax.experimental.pallas import tpu as pltpu


# ----------------------------------------------------------------------------
# Fused ColorLoss + SmoothnessLoss (+ MaterialConsistencyLoss @ 2x2) kernel
# ----------------------------------------------------------------------------
def _make_fused_kernel(TH: int, W: int, with_consistency: bool, use_roll: bool):
    def kernel(params_ref, p_ref, t_ref, h_ref, *rest):
        if with_consistency:
            mp_ref, color_acc, smooth_acc, cons_acc, carry_ref = rest
        else:
            color_acc, smooth_acc, carry_ref = rest
            mp_ref = cons_acc = None

        step = pl.program_id(0)
        scale_color = params_ref[0]   # color_weight / (B*H*W)   (== for L and ab terms)
        scale_gx = params_ref[1]      # smooth_weight / (B*C*H*(W-1))
        scale_gy = params_ref[2]      # smooth_weight / (B*C*(H-1)*W)

        @pl.when(step == 0)
        def _init():
            color_acc[...] = jnp.zeros_like(color_acc)
            smooth_acc[...] = jnp.zeros_like(smooth_acc)

        # ---- ColorLoss -----------------------------------------------------
        # LAB transform is linear  =>  lab(p) - lab(t) == lab(p - t).
        d = p_ref[...].astype(jnp.float32) - t_ref[...].astype(jnp.float32)  # (B,3,TH,W)
        dr, dg, db = d[:, 0], d[:, 1], d[:, 2]                               # (B,TH,W)
        dl = 0.299 * dr + 0.587 * dg + 0.114 * db
        da = 0.5 * (dr - dg)
        dbc = 0.5 * (dr + dg - 2.0 * db)
        # weight*(mse_L + 2*mse_ab) == weight/(B*H*W) * sum(dl^2 + da^2 + db^2):
        # one scale, one cross-lane reduce.
        color_acc[...] += scale_color * jnp.sum(dl * dl + da * da + dbc * dbc)

        # ---- SmoothnessLoss (total variation on the height map) -------------
        h = h_ref[...].astype(jnp.float32)                                   # (BH,TH,W)
        if use_roll:
            # lane-axis neighbour via XLU roll + mask of the last column
            nxt = pltpu.roll(h, shift=-1, axis=2)
            lane = jax.lax.broadcasted_iota(jnp.int32, h.shape, 2)
            gx_sum = jnp.sum(jnp.where(lane < W - 1, jnp.abs(h - nxt), 0.0))
        else:
            gx_sum = jnp.sum(jnp.abs(h[:, :, :-1] - h[:, :, 1:]))
        if TH > 1:
            gy_sum = jnp.sum(jnp.abs(h[:, :-1, :] - h[:, 1:, :]))
        else:
            gy_sum = 0.0
        smooth_acc[...] += scale_gx * gx_sum + scale_gy * gy_sum

        # row-pair spanning the previous block (carried last row)
        @pl.when(step > 0)
        def _row_boundary():
            smooth_acc[...] += scale_gy * jnp.sum(
                jnp.abs(carry_ref[...] - h[:, 0, :]))

        carry_ref[...] = h[:, TH - 1, :]

        # ---- MaterialConsistencyLoss (only shape-valid at H == W == 2) ------
        if with_consistency:
            scale_cons = params_ref[3]                     # cons_weight / (4*B)
            t = t_ref[...].astype(jnp.float32)             # (B, 3, 2, 2)
            gray = (t[:, 0] + t[:, 1] + t[:, 2]) * (1.0 / 3.0)              # (B,2,2)
            gxi = jnp.abs(gray[:, :, 0:1] - gray[:, :, 1:2])                # (B,2,1)
            gyi = jnp.abs(gray[:, 0:1, :] - gray[:, 1:2, :])                # (B,1,2)
            ew = jnp.exp(-5.0 * (gxi + gyi))                                # (B,2,2)
            mp = mp_ref[...].astype(jnp.float32)                            # (B,M,2,2)
            mgx = jnp.sum(jnp.abs(mp[:, :, :, 0:1] - mp[:, :, :, 1:2]), axis=1)  # (B,2,1)
            mgy = jnp.sum(jnp.abs(mp[:, :, 0:1, :] - mp[:, :, 1:2, :]), axis=1)  # (B,1,2)
            cons = jnp.sum(ew * mgx) + jnp.sum(ew * mgy)
            cons_acc[...] = jnp.broadcast_to(
                jnp.reshape(scale_cons * cons, (1, 1)), cons_acc.shape)

    return kernel


def _pick_row_tile(B: int, H: int, W: int, itemsize: int) -> int:
    """Row tile of H: ~2 MiB per pred tile, multiple of 8 dividing H (else H)."""
    target = 2 * 1024 * 1024
    row_bytes = max(1, B * 3 * W * itemsize)
    if H * row_bytes <= target or H <= 8:
        return H
    rows = max(8, (target // row_bytes) // 8 * 8)
    rows = min(rows, H)
    while rows > 8 and H % rows != 0:
        rows -= 8
    if H % rows != 0:
        rows = H
    return rows


def _fused_losses(pred, target, height_map, material_probs,
                  color_weight, smoothness_weight, consistency_weight):
    B, C, H, W = pred.shape
    assert C == 3 and target.shape == pred.shape
    Bh, Ch, Hh, Wh = height_map.shape
    assert (Bh, Hh, Wh) == (B, H, W)

    with_cons = material_probs is not None
    if with_cons:
        Bm, M, Hm, Wm = material_probs.shape
        assert (Bm, Hm, Wm) == (B, H, W) and H == 2 and W == 2

    BH = B * Ch
    h3 = height_map.reshape(BH, H, W)          # free reshape (contiguous)

    TH = _pick_row_tile(B, H, W, pred.dtype.itemsize)
    grid = (H // TH,)
    use_roll = (W % 128 == 0)

    # Traced scalar parameters in SMEM -> no recompile when loss weights change.
    scale_color = jnp.asarray(color_weight, jnp.float32) / (B * H * W)
    scale_gx = jnp.asarray(smoothness_weight, jnp.float32) / (BH * H * (W - 1))
    scale_gy = jnp.asarray(smoothness_weight, jnp.float32) / (BH * (H - 1) * W)
    if with_cons:
        scale_cons = jnp.asarray(consistency_weight, jnp.float32) / (4.0 * B)
    else:
        scale_cons = jnp.zeros((), jnp.float32)
    params = jnp.stack([scale_color, scale_gx, scale_gy, scale_cons])

    in_specs = [
        pl.BlockSpec(memory_space=pltpu.MemorySpace.SMEM),          # params
        pl.BlockSpec((B, 3, TH, W), lambda i: (0, 0, i, 0)),        # pred
        pl.BlockSpec((B, 3, TH, W), lambda i: (0, 0, i, 0)),        # target
        pl.BlockSpec((BH, TH, W), lambda i: (0, i, 0)),             # height
    ]
    inputs = [params, pred, target, h3]
    if with_cons:
        in_specs.append(pl.BlockSpec((B, M, 2, 2), lambda i: (0, 0, 0, 0)))
        inputs.append(material_probs)

    n_out = 3 if with_cons else 2
    out_shape = tuple(jax.ShapeDtypeStruct((8, 128), jnp.float32)
                      for _ in range(n_out))
    out_specs = tuple(pl.BlockSpec((8, 128), lambda i: (0, 0))
                      for _ in range(n_out))

    outs = pl.pallas_call(
        _make_fused_kernel(TH, W, with_cons, use_roll),
        grid=grid,
        in_specs=in_specs,
        out_specs=out_specs,
        out_shape=out_shape,
        scratch_shapes=[pltpu.VMEM((BH, W), jnp.float32)],          # carried last row
        compiler_params=pltpu.CompilerParams(
            dimension_semantics=("arbitrary",),                     # reduction axis
            vmem_limit_bytes=32 * 1024 * 1024,                      # safe on v5e/v6e/v7x
        ),
    )(*inputs)

    color = outs[0][0, 0]
    smooth = outs[1][0, 0]
    cons = outs[2][0, 0] if with_cons else jnp.zeros((), jnp.float32)
    return color, smooth, cons


# ----------------------------------------------------------------------------
# Standalone MaterialConsistencyLoss kernel (H == W == 2)
# ----------------------------------------------------------------------------
def _consistency_kernel(scale_ref, mp_ref, img_ref, out_ref):
    # mp_ref: (TB, M, 4)  img_ref: (TB, C, 4); lanes are the 2x2 positions
    # in row-major order: 0=(h0,w0) 1=(h0,w1) 2=(h1,w0) 3=(h1,w1).
    scale = scale_ref[0]
    img = img_ref[...].astype(jnp.float32)
    C = img.shape[1]
    gray = img[:, 0, :]
    for c in range(1, C):
        gray = gray + img[:, c, :]
    gray = gray * (1.0 / C)                                          # (TB, 4)

    g00, g01, g10, g11 = gray[:, 0:1], gray[:, 1:2], gray[:, 2:3], gray[:, 3:4]
    gx0 = jnp.abs(g00 - g01)      # image grad_x at h=0
    gx1 = jnp.abs(g10 - g11)      # image grad_x at h=1
    gy0 = jnp.abs(g00 - g10)      # image grad_y at w=0
    gy1 = jnp.abs(g01 - g11)      # image grad_y at w=1
    e00 = jnp.exp(-5.0 * (gx0 + gy0))
    e01 = jnp.exp(-5.0 * (gx0 + gy1))
    e10 = jnp.exp(-5.0 * (gx1 + gy0))
    e11 = jnp.exp(-5.0 * (gx1 + gy1))

    mp = mp_ref[...].astype(jnp.float32)                             # (TB, M, 4)
    m00, m01, m10, m11 = mp[:, :, 0:1], mp[:, :, 1:2], mp[:, :, 2:3], mp[:, :, 3:4]
    mgx0 = jnp.sum(jnp.abs(m00 - m01), axis=1)                       # (TB, 1)
    mgx1 = jnp.sum(jnp.abs(m10 - m11), axis=1)
    mgy0 = jnp.sum(jnp.abs(m00 - m10), axis=1)
    mgy1 = jnp.sum(jnp.abs(m01 - m11), axis=1)

    # replicate-pad-then-crop of edge_weight in the reference is an identity.
    part = jnp.sum(mgx0 * (e00 + e01) + mgx1 * (e10 + e11)
                   + mgy0 * (e00 + e10) + mgy1 * (e01 + e11))
    out_ref[...] = jnp.broadcast_to(jnp.reshape(scale * part, (1, 1, 1)),
                                    out_ref.shape)


@jax.jit
def material_consistency_loss(material_probs, image, weight=1.0):
    B, M, H, W = material_probs.shape
    Bi, C, Hi, Wi = image.shape
    assert (B, H, W) == (Bi, Hi, Wi)
    # The reference broadcast grad_x (B,1,H,W-1) + grad_y (B,1,H-1,W) is only
    # shape-valid when H == W == 2 (any other size raises in PyTorch).
    assert H == 2 and W == 2, "MaterialConsistencyLoss requires H == W == 2"

    mp = material_probs.reshape(B, M, 4)     # free reshapes, no HBM transpose
    img = image.reshape(B, C, 4)

    # Single chunk unless B is large (extra grid steps are pure overhead on
    # v5e/v6e); >= 2 "parallel" chunks let v7x's two TensorCores split the work.
    TB = B
    if B > 2048:
        for cand in (2048, 1024, 512, 256):
            if B % cand == 0:
                TB = cand
                break
    num_chunks = B // TB

    scale = jnp.reshape(jnp.asarray(weight, jnp.float32) / (4.0 * B), (1,))

    partials = pl.pallas_call(
        _consistency_kernel,
        grid=(num_chunks,),
        in_specs=[
            pl.BlockSpec(memory_space=pltpu.MemorySpace.SMEM),       # scale
            pl.BlockSpec((TB, M, 4), lambda c: (c, 0, 0)),
            pl.BlockSpec((TB, C, 4), lambda c: (c, 0, 0)),
        ],
        out_specs=pl.BlockSpec((1, 8, 128), lambda c: (c, 0, 0)),    # lane-dense slab
        out_shape=jax.ShapeDtypeStruct((num_chunks, 8, 128), jnp.float32),
        compiler_params=pltpu.CompilerParams(
            dimension_semantics=("parallel",),
            vmem_limit_bytes=32 * 1024 * 1024,
        ),
    )(scale, mp, img)

    return jnp.sum(partials[:, 0, 0])


# ----------------------------------------------------------------------------
# CombinedLoss.forward
# ----------------------------------------------------------------------------
@jax.jit
def combined_loss(pred_image, target_image, height_map, material_probs,
                  perceptual_weight=1.0, color_weight=1.0,
                  smoothness_weight=0.1, consistency_weight=0.5):
    # TODO(synk): PerceptualLoss needs pretrained VGG16 weights (external data);
    # it does not feed total_loss (total_loss = color), so it is reported as 0.0.
    perceptual = jnp.zeros((), jnp.float32)

    _, _, H, W = pred_image.shape
    mB, _, mH, mW = material_probs.shape
    # Consistency is only shape-valid (in PyTorch) when everything is 2x2;
    # otherwise CombinedLoss catches the RuntimeError and reports 0.0.
    cons_active = (H == 2 and W == 2 and mH == 2 and mW == 2
                   and mB == pred_image.shape[0])

    color, smoothness, consistency = _fused_losses(
        pred_image, target_image, height_map,
        material_probs if cons_active else None,
        color_weight, smoothness_weight, consistency_weight)

    total = color
    return total, {"total": total, "perceptual": perceptual, "color": color,
                   "smoothness": smoothness, "consistency": consistency}


# ----------------------------------------------------------------------------
# Pure-JAX references (verification only)
# ----------------------------------------------------------------------------
def _rgb_to_lab_ref(rgb):
    r, g, b = rgb[:, 0:1], rgb[:, 1:2], rgb[:, 2:3]
    l = 0.299 * r + 0.587 * g + 0.114 * b
    a = 0.5 * (r - g)
    b_comp = 0.5 * (g + r - 2.0 * b)
    return jnp.concatenate([l, a, b_comp], axis=1)


def _reference_color(pred, target, weight=1.0):
    p, t = _rgb_to_lab_ref(pred), _rgb_to_lab_ref(target)
    l_loss = jnp.mean((p[:, 0:1] - t[:, 0:1]) ** 2)
    ab_loss = jnp.mean((p[:, 1:3] - t[:, 1:3]) ** 2)
    return weight * (l_loss + 2.0 * ab_loss)


def _reference_smoothness(hm, weight=1.0):
    gx = jnp.abs(hm[:, :, :, :-1] - hm[:, :, :, 1:])
    gy = jnp.abs(hm[:, :, :-1, :] - hm[:, :, 1:, :])
    return weight * (jnp.mean(gx) + jnp.mean(gy))


def _reference_consistency(material_probs, image, weight=1.0):
    gray = jnp.mean(image, axis=1, keepdims=True)
    grad_x = jnp.abs(gray[:, :, :, :-1] - gray[:, :, :, 1:])
    grad_y = jnp.abs(gray[:, :, :-1, :] - gray[:, :, 1:, :])
    edge_weight = jnp.exp(-5.0 * (grad_x + grad_y))
    mgx = jnp.abs(material_probs[:, :, :, :-1] - material_probs[:, :, :, 1:])
    mgy = jnp.abs(material_probs[:, :, :-1, :] - material_probs[:, :, 1:, :])
    ew_x = jnp.pad(edge_weight, ((0, 0), (0, 0), (0, 0), (0, 1)), mode="edge")
    ew_y = jnp.pad(edge_weight, ((0, 0), (0, 0), (0, 1), (0, 0)), mode="edge")
    loss = (jnp.mean(ew_x[:, :, :, :-1] * jnp.sum(mgx, axis=1, keepdims=True))
            + jnp.mean(ew_y[:, :, :-1, :] * jnp.sum(mgy, axis=1, keepdims=True)))
    return weight * loss


# ----------------------------------------------------------------------------
if __name__ == "__main__":
    key = jax.random.PRNGKey(0)
    kp, kt, kh, km, kp2, kt2, kh2, km2 = jax.random.split(key, 8)

    # --- CombinedLoss at demo scale (consistency gracefully 0, as in torch) ---
    B, M, C, H, W = 2, 4, 3, 16, 16
    pred = jax.random.uniform(kp, (B, C, H, W), dtype=jnp.float32)
    target = jax.random.uniform(kt, (B, C, H, W), dtype=jnp.float32)
    height = jax.random.uniform(kh, (B, 1, H, W), dtype=jnp.float32)
    mats = jax.nn.softmax(jax.random.normal(km, (B, M, H, W), dtype=jnp.float32), axis=1)

    total, losses = combined_loss(pred, target, height, mats,
                                  color_weight=1.0, smoothness_weight=0.1,
                                  consistency_weight=0.5)
    jax.block_until_ready(total)

    ref_color = _reference_color(pred, target, 1.0)
    ref_smooth = _reference_smoothness(height, 0.1)
    assert jnp.allclose(total, ref_color, rtol=1e-5, atol=1e-6), (total, ref_color)
    assert jnp.allclose(losses["color"], ref_color, rtol=1e-5, atol=1e-6)
    assert jnp.allclose(losses["smoothness"], ref_smooth, rtol=1e-5, atol=1e-6)
    assert jnp.allclose(losses["consistency"], 0.0)
    assert jnp.allclose(losses["perceptual"], 0.0)

    # --- CombinedLoss at 2x2: consistency is shape-valid and fused in ---
    pred2 = jax.random.uniform(kp2, (B, C, 2, 2), dtype=jnp.float32)
    target2 = jax.random.uniform(kt2, (B, C, 2, 2), dtype=jnp.float32)
    height2 = jax.random.uniform(kh2, (B, 1, 2, 2), dtype=jnp.float32)
    mats2 = jax.nn.softmax(jax.random.normal(km2, (B, M, 2, 2), dtype=jnp.float32), axis=1)

    total2, losses2 = combined_loss(pred2, target2, height2, mats2,
                                    color_weight=1.0, smoothness_weight=0.1,
                                    consistency_weight=0.5)
    jax.block_until_ready(total2)

    ref_color2 = _reference_color(pred2, target2, 1.0)
    ref_smooth2 = _reference_smoothness(height2, 0.1)
    ref_cons2 = _reference_consistency(mats2, target2, 0.5)
    assert jnp.allclose(losses2["color"], ref_color2, rtol=1e-5, atol=1e-6)
    assert jnp.allclose(losses2["smoothness"], ref_smooth2, rtol=1e-5, atol=1e-6)
    assert jnp.allclose(losses2["consistency"], ref_cons2, rtol=1e-5, atol=1e-6)
    assert jnp.allclose(total2, ref_color2, rtol=1e-5, atol=1e-6)

    # --- standalone MaterialConsistencyLoss kernel ---
    cons = jax.block_until_ready(material_consistency_loss(mats2, target2, 0.5))
    assert jnp.allclose(cons, ref_cons2, rtol=1e-5, atol=1e-6), (cons, ref_cons2)

    print("KERNEL_OK")
</pallas_src>

<mosaic_0001>
module attributes {stable_mosaic.version = 11 : i64} {
  func.func @kernel(%arg0: i32, %arg1: memref<4xf32, #tpu.memory_space<smem>>, %arg2: memref<2x3x16x16xf32, #tpu.memory_space<vmem>>, %arg3: memref<2x3x16x16xf32, #tpu.memory_space<vmem>>, %arg4: memref<2x16x16xf32, #tpu.memory_space<vmem>>, %arg5: memref<8x128xf32, #tpu.memory_space<vmem>>, %arg6: memref<8x128xf32, #tpu.memory_space<vmem>>, %arg7: memref<2x16xf32, #tpu.memory_space<vmem>>) attributes {dimension_semantics = [#tpu.dimension_semantics<arbitrary>], iteration_bounds = array<i64: 1>, scalar_prefetch = 0 : i64, scratch_operands = 1 : i64, tpu.core_type = #tpu.core_type<tc>, window_params = [{transform_indices = @transform_0, window_bounds = array<i64: 4>}, {transform_indices = @transform_1, window_bounds = array<i64: 2, 3, 16, 16>}, {transform_indices = @transform_2, window_bounds = array<i64: 2, 3, 16, 16>}, {transform_indices = @transform_3, window_bounds = array<i64: 2, 16, 16>}, {pipeline_mode = #tpu.pipeline_mode<synchronous>, transform_indices = @transform_4, window_bounds = array<i64: 8, 128>}, {pipeline_mode = #tpu.pipeline_mode<synchronous>, transform_indices = @transform_5, window_bounds = array<i64: 8, 128>}]} {
    %c0 = arith.constant 0 : index
    %0 = memref.load %arg1[%c0] : memref<4xf32, #tpu.memory_space<smem>>
    %c1 = arith.constant 1 : index
    %1 = memref.load %arg1[%c1] : memref<4xf32, #tpu.memory_space<smem>>
    %c2 = arith.constant 2 : index
    %2 = memref.load %arg1[%c2] : memref<4xf32, #tpu.memory_space<smem>>
    %c0_i32 = arith.constant 0 : i32
    %3 = arith.cmpi eq, %arg0, %c0_i32 : i32
    %4 = arith.extui %3 : i1 to i32
    %c0_i32_0 = arith.constant 0 : i32
    %5 = arith.cmpi ne, %4, %c0_i32_0 : i32
    scf.if %5 {
      %cst_32 = arith.constant 0.000000e+00 : f32
      %76 = vector.broadcast %cst_32 : f32 to vector<8x128xf32>
      %c0_33 = arith.constant 0 : index
      %c0_34 = arith.constant 0 : index
      %77 = vector.load %arg5[%c0_33, %c0_34] : memref<8x128xf32, #tpu.memory_space<vmem>>, vector<8x128xf32>
      tpu.vector_store %arg5[%c0_33, %c0_34], %76 {strides = array<i32>} : memref<8x128xf32, #tpu.memory_space<vmem>>, vector<8x128xf32>,
      %cst_35 = arith.constant 0.000000e+00 : f32
      %78 = vector.broadcast %cst_35 : f32 to vector<8x128xf32>
      %c0_36 = arith.constant 0 : index
      %c0_37 = arith.constant 0 : index
      %79 = vector.load %arg6[%c0_36, %c0_37] : memref<8x128xf32, #tpu.memory_space<vmem>>, vector<8x128xf32>
      tpu.vector_store %arg6[%c0_36, %c0_37], %78 {strides = array<i32>} : memref<8x128xf32, #tpu.memory_space<vmem>>, vector<8x128xf32>,
    } else {
    }
    %c0_1 = arith.constant 0 : index
    %c0_2 = arith.constant 0 : index
    %c0_3 = arith.constant 0 : index
    %c0_4 = arith.constant 0 : index
    %6 = vector.load %arg2[%c0_1, %c0_2, %c0_3, %c0_4] : memref<2x3x16x16xf32, #tpu.memory_space<vmem>>, vector<2x3x16x16xf32>
    %c0_5 = arith.constant 0 : index
    %c0_6 = arith.constant 0 : index
    %c0_7 = arith.constant 0 : index
    %c0_8 = arith.constant 0 : index
    %7 = vector.load %arg3[%c0_5, %c0_6, %c0_7, %c0_8] : memref<2x3x16x16xf32, #tpu.memory_space<vmem>>, vector<2x3x16x16xf32>
    %8 = arith.subf %6, %7 : vector<2x3x16x16xf32>
    %9 = vector.extract_strided_slice %8 {offsets = [0, 0, 0, 0], sizes = [2, 1, 16, 16], strides = [1, 1, 1, 1]} : vector<2x3x16x16xf32> to vector<2x1x16x16xf32>
    %10 = vector.shape_cast %9 : vector<2x1x16x16xf32> to vector<2x16x16xf32>
    %11 = vector.extract_strided_slice %8 {offsets = [0, 1, 0, 0], sizes = [2, 1, 16, 16], strides = [1, 1, 1, 1]} : vector<2x3x16x16xf32> to vector<2x1x16x16xf32>
    %12 = vector.shape_cast %11 : vector<2x1x16x16xf32> to vector<2x16x16xf32>
    %13 = vector.extract_strided_slice %8 {offsets = [0, 2, 0, 0], sizes = [2, 1, 16, 16], strides = [1, 1, 1, 1]} : vector<2x3x16x16xf32> to vector<2x1x16x16xf32>
    %14 = vector.shape_cast %13 : vector<2x1x16x16xf32> to vector<2x16x16xf32>
    %cst = arith.constant 2.990000e-01 : f32
    %15 = vector.broadcast %cst : f32 to vector<2x16x16xf32>
    %16 = arith.mulf %15, %10 : vector<2x16x16xf32>
    %cst_9 = arith.constant 5.870000e-01 : f32
    %17 = vector.broadcast %cst_9 : f32 to vector<2x16x16xf32>
    %18 = arith.mulf %17, %12 : vector<2x16x16xf32>
    %19 = arith.addf %16, %18 : vector<2x16x16xf32>
    %cst_10 = arith.constant 1.140000e-01 : f32
    %20 = vector.broadcast %cst_10 : f32 to vector<2x16x16xf32>
    %21 = arith.mulf %20, %14 : vector<2x16x16xf32>
    %22 = arith.addf %19, %21 : vector<2x16x16xf32>
    %23 = arith.subf %10, %12 : vector<2x16x16xf32>
    %cst_11 = arith.constant 5.000000e-01 : f32
    %24 = vector.broadcast %cst_11 : f32 to vector<2x16x16xf32>
    %25 = arith.mulf %24, %23 : vector<2x16x16xf32>
    %26 = arith.addf %10, %12 : vector<2x16x16xf32>
    %cst_12 = arith.constant 2.000000e+00 : f32
    %27 = vector.broadcast %cst_12 : f32 to vector<2x16x16xf32>
    %28 = arith.mulf %27, %14 : vector<2x16x16xf32>
    %29 = arith.subf %26, %28 : vector<2x16x16xf32>
    %cst_13 = arith.constant 5.000000e-01 : f32
    %30 = vector.broadcast %cst_13 : f32 to vector<2x16x16xf32>
    %31 = arith.mulf %30, %29 : vector<2x16x16xf32>
    %c0_14 = arith.constant 0 : index
    %c0_15 = arith.constant 0 : index
    %32 = vector.load %arg5[%c0_14, %c0_15] : memref<8x128xf32, #tpu.memory_space<vmem>>, vector<8x128xf32>
    %33 = arith.mulf %22, %22 : vector<2x16x16xf32>
    %34 = arith.mulf %25, %25 : vector<2x16x16xf32>
    %35 = arith.addf %33, %34 : vector<2x16x16xf32>
    %36 = arith.mulf %31, %31 : vector<2x16x16xf32>
    %37 = arith.addf %35, %36 : vector<2x16x16xf32>
    %38 = vector.shape_cast %37 : vector<2x16x16xf32> to vector<1x2x16x16xf32>
    %cst_16 = arith.constant dense<0.000000e+00> : vector<1xf32>
    %39 = vector.multi_reduction <add>, %38, %cst_16 [1, 2, 3] : vector<1x2x16x16xf32> to vector<1xf32>
    %40 = vector.shape_cast %39 : vector<1xf32> to vector<1x1x1x1xf32>
    %41 = vector.extract %40[0, 0, 0, 0] : f32 from vector<1x1x1x1xf32>
    %42 = arith.mulf %0, %41 : f32
    %43 = vector.broadcast %42 : f32 to vector<8x128xf32>
    %44 = arith.addf %32, %43 : vector<8x128xf32>
    %c0_17 = arith.constant 0 : index
    %c0_18 = arith.constant 0 : index
    %45 = vector.load %arg5[%c0_17, %c0_18] : memref<8x128xf32, #tpu.memory_space<vmem>>, vector<8x128xf32>
    tpu.vector_store %arg5[%c0_17, %c0_18], %44 {strides = array<i32>} : memref<8x128xf32, #tpu.memory_space<vmem>>, vector<8x128xf32>,
    %c0_19 = arith.constant 0 : index
    %c0_20 = arith.constant 0 : index
    %c0_21 = arith.constant 0 : index
    %46 = vector.load %arg4[%c0_19, %c0_20, %c0_21] : memref<2x16x16xf32, #tpu.memory_space<vmem>>, vector<2x16x16xf32>
    %47 = vector.extract_strided_slice %46 {offsets = [0, 0, 0], sizes = [2, 16, 15], strides = [1, 1, 1]} : vector<2x16x16xf32> to vector<2x16x15xf32>
    %48 = vector.extract_strided_slice %46 {offsets = [0, 0, 1], sizes = [2, 16, 15], strides = [1, 1, 1]} : vector<2x16x16xf32> to vector<2x16x15xf32>
    %49 = arith.subf %47, %48 : vector<2x16x15xf32>
    %50 = math.absf %49 : vector<2x16x15xf32>
    %51 = vector.shape_cast %50 : vector<2x16x15xf32> to vector<1x2x16x15xf32>
    %cst_22 = arith.constant dense<0.000000e+00> : vector<1xf32>
    %52 = vector.multi_reduction <add>, %51, %cst_22 [1, 2, 3] : vector<1x2x16x15xf32> to vector<1xf32>
    %53 = vector.shape_cast %52 : vector<1xf32> to vector<1x1x1x1xf32>
    %54 = vector.extract %53[0, 0, 0, 0] : f32 from vector<1x1x1x1xf32>
    %55 = vector.extract_strided_slice %46 {offsets = [0, 0, 0], sizes = [2, 15, 16], strides = [1, 1, 1]} : vector<2x16x16xf32> to vector<2x15x16xf32>
    %56 = vector.extract_strided_slice %46 {offsets = [0, 1, 0], sizes = [2, 15, 16], strides = [1, 1, 1]} : vector<2x16x16xf32> to vector<2x15x16xf32>
    %57 = arith.subf %55, %56 : vector<2x15x16xf32>
    %58 = math.absf %57 : vector<2x15x16xf32>
    %59 = vector.shape_cast %58 : vector<2x15x16xf32> to vector<1x2x15x16xf32>
    %cst_23 = arith.constant dense<0.000000e+00> : vector<1xf32>
    %60 = vector.multi_reduction <add>, %59, %cst_23 [1, 2, 3] : vector<1x2x15x16xf32> to vector<1xf32>
    %61 = vector.shape_cast %60 : vector<1xf32> to vector<1x1x1x1xf32>
    %62 = vector.extract %61[0, 0, 0, 0] : f32 from vector<1x1x1x1xf32>
    %c0_24 = arith.constant 0 : index
    %c0_25 = arith.constant 0 : index
    %63 = vector.load %arg6[%c0_24, %c0_25] : memref<8x128xf32, #tpu.memory_space<vmem>>, vector<8x128xf32>
    %64 = arith.mulf %1, %54 : f32
    %65 = arith.mulf %2, %62 : f32
    %66 = arith.addf %64, %65 : f32
    %67 = vector.broadcast %66 : f32 to vector<8x128xf32>
    %68 = arith.addf %63, %67 : vector<8x128xf32>
    %c0_26 = arith.constant 0 : index
    %c0_27 = arith.constant 0 : index
    %69 = vector.load %arg6[%c0_26, %c0_27] : memref<8x128xf32, #tpu.memory_space<vmem>>, vector<8x128xf32>
    tpu.vector_store %arg6[%c0_26, %c0_27], %68 {strides = array<i32>} : memref<8x128xf32, #tpu.memory_space<vmem>>, vector<8x128xf32>,
    %c0_i32_28 = arith.constant 0 : i32
    %70 = arith.cmpi sgt, %arg0, %c0_i32_28 : i32
    %71 = arith.extui %70 : i1 to i32
    %c0_i32_29 = arith.constant 0 : i32
    %72 = arith.cmpi ne, %71, %c0_i32_29 : i32
    scf.if %72 {
      %c0_32 = arith.constant 0 : index
      %c0_33 = arith.constant 0 : index
      %76 = vector.load %arg6[%c0_32, %c0_33] : memref<8x128xf32, #tpu.memory_space<vmem>>, vector<8x128xf32>
      %c0_34 = arith.constant 0 : index
      %c0_35 = arith.constant 0 : index
      %77 = vector.load %arg7[%c0_34, %c0_35] : memref<2x16xf32, #tpu.memory_space<vmem>>, vector<2x16xf32>
      %78 = vector.extract_strided_slice %46 {offsets = [0, 0, 0], sizes = [2, 1, 16], strides = [1, 1, 1]} : vector<2x16x16xf32> to vector<2x1x16xf32>
      %79 = vector.shape_cast %78 : vector<2x1x16xf32> to vector<2x16xf32>
      %80 = arith.subf %77, %79 : vector<2x16xf32>
      %81 = math.absf %80 : vector<2x16xf32>
      %82 = vector.shape_cast %81 : vector<2x16xf32> to vector<1x2x16xf32>
      %cst_36 = arith.constant dense<0.000000e+00> : vector<1xf32>
      %83 = vector.multi_reduction <add>, %82, %cst_36 [1, 2] : vector<1x2x16xf32> to vector<1xf32>
      %84 = vector.shape_cast %83 : vector<1xf32> to vector<1x1x1xf32>
      %85 = vector.extract %84[0, 0, 0] : f32 from vector<1x1x1xf32>
      %86 = arith.mulf %2, %85 : f32
      %87 = vector.broadcast %86 : f32 to vector<8x128xf32>
      %88 = arith.addf %76, %87 : vector<8x128xf32>
      %c0_37 = arith.constant 0 : index
      %c0_38 = arith.constant 0 : index
      %89 = vector.load %arg6[%c0_37, %c0_38] : memref<8x128xf32, #tpu.memory_space<vmem>>, vector<8x128xf32>
      tpu.vector_store %arg6[%c0_37, %c0_38], %88 {strides = array<i32>} : memref<8x128xf32, #tpu.memory_space<vmem>>, vector<8x128xf32>,
    } else {
    }
    %73 = vector.extract_strided_slice %46 {offsets = [0, 15, 0], sizes = [2, 1, 16], strides = [1, 1, 1]} : vector<2x16x16xf32> to vector<2x1x16xf32>
    %74 = vector.shape_cast %73 : vector<2x1x16xf32> to vector<2x16xf32>
    %c0_30 = arith.constant 0 : index
    %c0_31 = arith.constant 0 : index
    %75 = vector.load %arg7[%c0_30, %c0_31] : memref<2x16xf32, #tpu.memory_space<vmem>>, vector<2x16xf32>
    tpu.vector_store %arg7[%c0_30, %c0_31], %74 {strides = array<i32>} : memref<2x16xf32, #tpu.memory_space<vmem>>, vector<2x16xf32>,
    return
  }
  func.func @transform_0(%arg0: i32) -> i32 {
    %c0_i32 = arith.constant 0 : i32
    %c0_i32_0 = arith.constant 0 : i32
    return %c0_i32 : i32
  }
  func.func @transform_1(%arg0: i32) -> (i32, i32, i32, i32) {
    %c0_i32 = arith.constant 0 : i32
    %c0_i32_0 = arith.constant 0 : i32
    %c0_i32_1 = arith.constant 0 : i32
    %c0_i32_2 = arith.constant 0 : i32
    return %c0_i32, %c0_i32_0, %arg0, %c0_i32_1 : i32, i32, i32, i32
  }
  func.func @transform_2(%arg0: i32) -> (i32, i32, i32, i32) {
    %c0_i32 = arith.constant 0 : i32
    %c0_i32_0 = arith.constant 0 : i32
    %c0_i32_1 = arith.constant 0 : i32
    %c0_i32_2 = arith.constant 0 : i32
    return %c0_i32, %c0_i32_0, %arg0, %c0_i32_1 : i32, i32, i32, i32
  }
  func.func @transform_3(%arg0: i32) -> (i32, i32, i32) {
    %c0_i32 = arith.constant 0 : i32
    %c0_i32_0 = arith.constant 0 : i32
    %c0_i32_1 = arith.constant 0 : i32
    return %c0_i32, %arg0, %c0_i32_0 : i32, i32, i32
  }
  func.func @transform_4(%arg0: i32) -> (i32, i32) {
    %c0_i32 = arith.constant 0 : i32
    %c0_i32_0 = arith.constant 0 : i32
    %c0_i32_1 = arith.constant 0 : i32
    return %c0_i32, %c0_i32_0 : i32, i32
  }
  func.func @transform_5(%arg0: i32) -> (i32, i32) {
    %c0_i32 = arith.constant 0 : i32
    %c0_i32_0 = arith.constant 0 : i32
    %c0_i32_1 = arith.constant 0 : i32
    return %c0_i32, %c0_i32_0 : i32, i32
  }
}

</mosaic_0001>

<bundles_post_ra>
// kernel: combined_loss.1
= control target key start
LH: loop header
LB: loop body
LE: loop exit
PB: predicated region body
PF: predicated region fallthrough
CT: control target
= control target key end

     0   :  { %11 = vsyncpa [#allocation5], 0  ;;  %s546_s0 = inlined_call_operand.vmem [shape: f32[4], index: 0, kind: input, shape index: {}]   ;;  %s547_s1 = inlined_call_operand.hbm [shape: f32[2,3,16,16], index: 1, kind: input, shape index: {}]   ;;  %s548_s2 = inlined_call_operand.hbm [shape: f32[2,3,16,16], index: 2, kind: input, shape index: {}]   ;;  %s549_s3 = inlined_call_operand.hbm [shape: f32[2,16,16], index: 3, kind: input, shape index: {}]   ;;  %s550_s4 = inlined_call_operand.vmem [shape: f32[8,128], index: 4, kind: output, shape index: {0}]   ;;  %s551_s5 = inlined_call_operand.vmem [shape: f32[8,128], index: 5, kind: output, shape index: {1}]  }
   0x1   :  { %12 = vsyncpa [#allocation4], 0 }
   0x2   :  { %13 = vsyncpa [#allocation8], 0  ;;  %s20_s20 = sshll.u32 %s546_s0, 4  ;;  %s431_s21 = smov [#allocation7]   ;;  %s21_s20 = int_to_ptr.vmem [resolvable:$true] %s20_s20 }
   0x3   :  { %s41_s22 = sshll.u32 %s431_s21, 4  ;;  %s42_s22 = int_to_ptr.vmem [resolvable:$true] %s41_s22 }
   0x4   :  { %s361_s23 = scalar_lea.vmem %s42_s22, 1536  ;;  %p366_p1 = scmp.lt.s32.totalorder %s42_s22, %s42_s22 }
   0x5   :  { %p362_p0 = scmp.ne.s32.totalorder %s42_s22, %s361_s23  ;;  %p367_p2 = scmp.lt.s32.totalorder %s361_s23, %s361_s23 }
   0x7   :  { %p368_p3 = por %p367_p2, %p366_p1 }
   0x9   :  { %p369_p4 = pnand %p368_p3, %p362_p0 }
   0xb   :  { %372 = shalt.err (!%p369_p4)
}
   0xc   :  { %s432_s24 = smov 128   ;;  %s433_s25 = smov 8  }
   0xd   :  { %47 = dma.hbm_to_vmem [thread:$0]  %s548_s2, 1536, %s42_s22, [#allocation8], %s432_s24, %s432_s24, %s433_s25  }
   0xe   :  { %s373_s0 = scalar_lea.vmem %s21_s20, 16  ;;  %p378_p6 = scmp.lt.s32.totalorder %s21_s20, %s21_s20 }
   0xf   :  { %p374_p5 = scmp.ne.s32.totalorder %s21_s20, %s373_s0  ;;  %p379_p7 = scmp.lt.s32.totalorder %s373_s0, %s373_s0 }
  0x11   :  { %p380_p8 = por %p379_p7, %p378_p6 }
  0x13   :  { %p381_p9 = pnand %p380_p8, %p374_p5 }
  0x15   :  { %384 = shalt.err (!%p381_p9)
}
  0x16   :  { %s434_s28 = smov [#allocation3]   ;;  %s435_s29 = smov [#allocation6]  }
  0x17   :  { %23 = dma.vmem_to_smem %s21_s20, 16, %s434_s28, [#allocation5]  }
  0x18   :  { %s29_s30 = sshll.u32 %s435_s29, 4  ;;  %s436_s6 = smov [#allocation9]   ;;  %s30_s30 = int_to_ptr.vmem [resolvable:$true] %s29_s30 }
  0x19   :  { %s53_s7 = sshll.u32 %s436_s6, 4  ;;  %s393_s8 = scalar_lea.vmem %s30_s30, 1536  ;;  %s54_s7 = int_to_ptr.vmem [resolvable:$true] %s53_s7 }
  0x1a   :  { %p394_p10 = scmp.ne.s32.totalorder %s30_s30, %s393_s8  ;;  %p398_p11 = scmp.lt.s32.totalorder %s30_s30, %s30_s30 }
  0x1b   :  { %p399_p12 = scmp.lt.s32.totalorder %s393_s8, %s393_s8 }
  0x1d   :  { %p400_p13 = por %p399_p12, %p398_p11 }
  0x1f   :  { %p401_p0 = pnand %p400_p13, %p394_p10 }
  0x21   :  { %404 = shalt.err (!%p401_p0)
}
  0x22   :  { %35 = dma.hbm_to_vmem [thread:$0]  %s547_s1, 1536, %s30_s30, [#allocation4], %s432_s24, %s432_s24, %s433_s25  }
  0x23   :  { %s413_s10 = scalar_lea.vmem %s54_s7, 512  ;;  %p418_p2 = scmp.lt.s32.totalorder %s54_s7, %s54_s7 }
  0x24   :  { %p414_p1 = scmp.ne.s32.totalorder %s54_s7, %s413_s10  ;;  %p419_p3 = scmp.lt.s32.totalorder %s413_s10, %s413_s10 }
  0x26   :  { %p420_p4 = por %p419_p3, %p418_p2 }
  0x28   :  { %p421_p5 = pnand %p420_p4, %p414_p1 }
  0x2a   :  { %424 = shalt.err (!%p421_p5)
}
  0x2b   :  { %59 = dma.hbm_to_vmem [thread:$0]  %s549_s3, 512, %s54_s7, [#allocation8], %s432_s24, %s432_s24, %s433_s25  }
  0x2c   :  { %425 = dma.done.wait [#allocation5], 16  }
  0x2d   :  { %426 = vsyncadd [#allocation5], 4294967280 }
  0x2e   :  { %427 = dma.done.wait [#allocation4], 1536  }
  0x2f   :  { %428 = vsyncadd [#allocation4], 4294965760 }
  0x30   :  { %429 = dma.done.wait [#allocation8], 2048  }
  0x31   :  { %430 = vsyncadd [#allocation8], 4294965248 }
  0x32   :  { %72 = sfence }
  0x33   :  { %v489_v0 = vld [vmem:[#allocation9] sm:$0xff]  ;;  %v491_v1 = vld [vmem:[#allocation9 + $0x10] sm:$0xff]  ;;  %v493_v2 = vld [vmem:[#allocation9 + $0x8] sm:$0xff]  ;;  %s437_s1 = smov 127   ;;  %vm249_vm0 = vcmask 1046528   ;;  %vm183_vm1 = vcmask 130048  }
  0x34   :  { %212 = vrot.lane.b32.xlu0 %v489_v0, %s437_s1  ;;  %v250_v3 = vrot.slane %v489_v0, 1  ;;  %216 = vrot.lane.b32.xlu1 %v491_v1, %s437_s1  ;;  %v253_v4 = vrot.slane %v491_v1, 1  ;;  %v499_v5 = vld [vmem:[#allocation9 + $0x18] sm:$0xff]  ;;  %v82_v6 = vld [vmem:[#allocation6] sm:$0xff]  ;;  %v83_v7 = vld [vmem:[#allocation6 + $0x8] sm:$0xff]  ;;  %v251_v14 = vrot.slane %v493_v2, 1 }
  0x35   :  { %v84_v8 = vld [vmem:[#allocation6 + $0x10] sm:$0xff]  ;;  %v85_v9 = vld [vmem:[#allocation6 + $0x18] sm:$0xff]  ;;  %v86_v10 = vld [vmem:[#allocation6 + $0x20] sm:$0xff]  ;;  %v254_v15 = vrot.slane %v499_v5, 1  ;;  %vm269_vm2 = vcmask 129024   ;;  %vm232_vm3 = vcmask 121856  }
  0x36   :  { %v87_v11 = vld [vmem:[#allocation6 + $0x28] sm:$0xff]  ;;  %v88_v12 = vld [vmem:[#allocation6 + $0x30] sm:$0xff]  ;;  %v89_v13 = vld [vmem:[#allocation6 + $0x38] sm:$0xff]  ;;  %v505_v22 = vsel %vm249_vm0, %v250_v3, %v251_v14  ;;  %v514_v30 = vsub.f32 %v493_v2, %v251_v14  ;;  %s73_s3 = sld [smem:[#allocation3]] }
  0x37   :  { %v90_v16 = vld [vmem:[#allocation6 + $0x40] sm:$0xff]  ;;  %v91_v17 = vld [vmem:[#allocation6 + $0x48] sm:$0xff]  ;;  %v92_v18 = vld [vmem:[#allocation6 + $0x50] sm:$0xff]  ;;  %v509_v23 = vsel %vm249_vm0, %v253_v4, %v254_v15  ;;  %v260_v29 = vsub.f32 %v489_v0, %v505_v22  ;;  %s337_s17 = sld [smem:[#allocation3 + $0x1]] }
  0x38   :  { %214 = vrot.lane.b32.xlu0 %v493_v2, %s437_s1  ;;  %218 = vrot.lane.b32.xlu1 %v499_v5, %s437_s1  ;;  %v93_v19 = vld [vmem:[#allocation6 + $0x58] sm:$0xff]  ;;  %v94_v20 = vld [vmem:[#allocation7] sm:$0xff]  ;;  %v95_v21 = vld [vmem:[#allocation7 + $0x8] sm:$0xff]  ;;  %v262_v37 = vsub.f32 %v491_v1, %v509_v23  ;;  %s338_s18 = sld [smem:[#allocation3 + $0x2]] }
  0x39   :  { %v96_v24 = vld [vmem:[#allocation7 + $0x10] sm:$0xff]  ;;  %v97_v25 = vld [vmem:[#allocation7 + $0x18] sm:$0xff]  ;;  %v98_v26 = vld [vmem:[#allocation7 + $0x20] sm:$0xff]  ;;  %v106_v27 = vsub.f32 %v82_v6, %v94_v20  ;;  %v107_v28 = vsub.f32 %v83_v7, %v95_v21 }
  0x3a   :  { %v99_v31 = vld [vmem:[#allocation7 + $0x28] sm:$0xff]  ;;  %v100_v32 = vld [vmem:[#allocation7 + $0x30] sm:$0xff]  ;;  %v101_v33 = vld [vmem:[#allocation7 + $0x38] sm:$0xff]  ;;  %v108_v34 = vsub.f32 %v84_v8, %v96_v24  ;;  %v109_v35 = vsub.f32 %v85_v9, %v97_v25  ;;  %v110_v36 = vsub.f32 %v86_v10, %v98_v26 }
  0x3b   :  { %v102_v38 = vld [vmem:[#allocation7 + $0x40] sm:$0xff]  ;;  %v103_v39 = vld [vmem:[#allocation7 + $0x48] sm:$0xff]  ;;  %v104_v40 = vld [vmem:[#allocation7 + $0x50] sm:$0xff]  ;;  %v111_v41 = vsub.f32 %v87_v11, %v99_v31  ;;  %v112_v42 = vsub.f32 %v88_v12, %v100_v32  ;;  %v113_v43 = vsub.f32 %v89_v13, %v101_v33  ;;  %v118_v44 = vmul.f32 0.299, %v106_v27 }
  0x3c   :  { %v105_v45 = vld [vmem:[#allocation7 + $0x58] sm:$0xff]  ;;  %v114_v46 = vsub.f32 %v90_v16, %v102_v38  ;;  %v115_v47 = vsub.f32 %v91_v17, %v103_v39  ;;  %v116_v48 = vsub.f32 %v92_v18, %v104_v40  ;;  %v119_v49 = vmul.f32 0.299, %v107_v28 }
  0x3d   :  { %v117_v50 = vsub.f32 %v93_v19, %v105_v45  ;;  %v120_v51 = vmul.f32 0.299, %v112_v42  ;;  %v121_v52 = vmul.f32 0.299, %v113_v43  ;;  %v122_v53 = vmul.f32 0.587, %v108_v34 }
  0x3e   :  { %v123_v54 = vmul.f32 0.587, %v109_v35  ;;  %v124_v55 = vmul.f32 0.587, %v114_v46  ;;  %v125_v56 = vmul.f32 0.587, %v115_v47  ;;  %v138_v57 = vsub.f32 %v106_v27, %v108_v34 }
  0x3f   :  { %v126_v58 = vadd.f32 %v122_v53, %v118_v44  ;;  %v130_v59 = vmul.f32 0.114, %v110_v36  ;;  %v131_v60 = vmul.f32 0.114, %v111_v41  ;;  %v132_v61 = vmul.f32 0.114, %v116_v48 }
  0x40   :  { %v127_v62 = vadd.f32 %v123_v54, %v119_v49  ;;  %v128_v63 = vadd.f32 %v124_v55, %v120_v51  ;;  %v129_v3 = vadd.f32 %v125_v56, %v121_v52  ;;  %v133_v4 = vmul.f32 0.114, %v117_v50 }
  0x41   :  { %v134_v6 = vadd.f32 %v130_v59, %v126_v58  ;;  %v139_v7 = vsub.f32 %v107_v28, %v109_v35  ;;  %v140_v8 = vsub.f32 %v112_v42, %v114_v46  ;;  %v141_v9 = vsub.f32 %v113_v43, %v115_v47 }
  0x42   :  { %v135_v10 = vadd.f32 %v131_v60, %v127_v62  ;;  %v136_v11 = vadd.f32 %v132_v61, %v128_v63  ;;  %v137_v12 = vadd.f32 %v133_v4, %v129_v3  ;;  %v142_v13 = vmul.f32 0.5, %v138_v57 }
  0x43   :  { %v143_v14 = vmul.f32 0.5, %v139_v7  ;;  %v144_v16 = vmul.f32 0.5, %v140_v8  ;;  %v145_v17 = vmul.f32 0.5, %v141_v9  ;;  %v146_v18 = vadd.f32 %v108_v34, %v106_v27 }
  0x44   :  { %v147_v19 = vadd.f32 %v109_v35, %v107_v28  ;;  %v148_v20 = vadd.f32 %v114_v46, %v112_v42  ;;  %v149_v21 = vadd.f32 %v115_v47, %v113_v43  ;;  %v150_v24 = vmul.f32 2.0, %v110_v36 }
  0x45   :  { %v151_v25 = vmul.f32 2.0, %v111_v41  ;;  %v152_v26 = vmul.f32 2.0, %v116_v48  ;;  %v153_v31 = vmul.f32 2.0, %v117_v50  ;;  %v163_v32 = vmul.f32 %v134_v6, %v134_v6 }
  0x46   :  { %v154_v33 = vsub.f32 %v146_v18, %v150_v24  ;;  %v164_v38 = vmul.f32 %v135_v10, %v135_v10  ;;  %v165_v39 = vmul.f32 %v136_v11, %v136_v11  ;;  %v166_v40 = vmul.f32 %v137_v12, %v137_v12 }
  0x47   :  { %v155_v44 = vsub.f32 %v147_v19, %v151_v25  ;;  %v156_v45 = vsub.f32 %v148_v20, %v152_v26  ;;  %v157_v49 = vsub.f32 %v149_v21, %v153_v31  ;;  %v167_v51 = vmul.f32 %v142_v13, %v142_v13 }
  0x48   :  { %v158_v52 = vmul.f32 0.5, %v154_v33  ;;  %v168_v27 = vmul.f32 %v143_v14, %v143_v14  ;;  %v169_v34 = vmul.f32 %v144_v16, %v144_v16  ;;  %v170_v53 = vmul.f32 %v145_v17, %v145_v17 }
  0x49   :  { %v159_v28 = vmul.f32 0.5, %v155_v44  ;;  %v160_v35 = vmul.f32 0.5, %v156_v45  ;;  %v161_v42 = vmul.f32 0.5, %v157_v49  ;;  %v171_v36 = vadd.f32 %v167_v51, %v163_v32 }
  0x4a   :  { %v172_v41 = vadd.f32 %v168_v27, %v164_v38  ;;  %v173_v43 = vadd.f32 %v169_v34, %v165_v39  ;;  %v174_v46 = vadd.f32 %v170_v53, %v166_v40  ;;  %v175_v47 = vmul.f32 %v158_v52, %v158_v52 }
  0x4b   :  { %v176_v48 = vmul.f32 %v159_v28, %v159_v28  ;;  %v177_v50 = vmul.f32 %v160_v35, %v160_v35  ;;  %v178_v54 = vmul.f32 %v161_v42, %v161_v42  ;;  %v264_v55 = vand.u32 2147483647, %v260_v29 }
  0x4c   :  { %v179_v56 = vadd.f32 %v175_v47, %v171_v36  ;;  %v263_v57 = vsub.f32 %v499_v5, %v254_v15  ;;  %v265_v58 = vand.u32 2147483647, %v514_v30  ;;  %v266_v59 = vand.u32 2147483647, %v262_v37 }
  0x4d   :  { %v180_v60 = vadd.f32 %v176_v48, %v172_v41  ;;  %v181_v61 = vadd.f32 %v177_v50, %v173_v43  ;;  %v182_v62 = vadd.f32 %v178_v54, %v174_v46  ;;  %v268_v63 = vsel %vm183_vm1, %v264_v55, 0.0 }
  0x4e   :  { %v184_v3 = vsel %vm183_vm1, %v179_v56, 0.0  ;;  %v270_v22 = vsel %vm269_vm2, %v265_v58, 0.0  ;;  %v267_v30 = vand.u32 2147483647, %v263_v57  ;;  %v272_v7 = vsel %vm183_vm1, %v266_v59, 0.0 }
  0x4f   :  { %v185_v29 = vsel %vm183_vm1, %v180_v60, 0.0  ;;  %v187_v4 = vsel %vm183_vm1, %v181_v61, 0.0  ;;  %v271_v15 = vadd.f32 %v270_v22, %v268_v63  ;;  %v189_v23 = vsel %vm183_vm1, %v182_v62, 0.0 }
  0x50   :  { %v186_v6 = vadd.f32 %v185_v29, %v184_v3  ;;  %v274_v10 = vsel %vm269_vm2, %v267_v30, 0.0 }
  0x51   :  { %v273_v8 = vadd.f32 %v272_v7, %v271_v15 }
  0x52   :  { %v188_v37 = vadd.f32 %v187_v4, %v186_v6 }
  0x53   :  { %v275_v11 = vadd.f32 %v274_v10, %v273_v8 }
  0x54   :  { %v190_v9 = vadd.f32 %v189_v23, %v188_v37 }
  0x57   :  { %191 = vadd.xlane.f32.xlu0 %v190_v9 }
  0x5b   :  { %276 = vadd.xlane.f32.xlu0 %v275_v11 }
  0xa6   :  { %v213_v12 = vpop.permute.xlu0 %212  ;;  %v217_v13 = vpop.permute.xlu1 %216 }
  0xa7   :  { %v224_v14 = vsub.f32 %v489_v0, %v213_v12  ;;  %v226_v16 = vsub.f32 %v491_v1, %v217_v13 }
  0xa9   :  { %v228_v19 = vand.u32 2147483647, %v224_v14  ;;  %v230_v24 = vand.u32 2147483647, %v226_v16 }
  0xaa   :  { %v215_v17 = vpop.permute.xlu0 %214  ;;  %v219_v18 = vpop.permute.xlu1 %218 }
  0xab   :  { %v225_v20 = vsub.f32 %v493_v2, %v215_v17  ;;  %v227_v21 = vsub.f32 %v499_v5, %v219_v18  ;;  %v233_v31 = vsel %vm232_vm3, %v228_v19, 0.0  ;;  %v236_v38 = vsel %vm232_vm3, %v230_v24, 0.0 }
  0xad   :  { %v229_v25 = vand.u32 2147483647, %v225_v20  ;;  %v231_v26 = vand.u32 2147483647, %v227_v21 }
  0xaf   :  { %v234_v32 = vsel %vm232_vm3, %v229_v25, 0.0  ;;  %v238_v39 = vsel %vm232_vm3, %v231_v26, 0.0 }
  0xb0   :  { %v235_v33 = vadd.f32 %v234_v32, %v233_v31 }
  0xb2   :  { %v237_v40 = vadd.f32 %v236_v38, %v235_v33 }
  0xb4   :  { %v239_v0 = vadd.f32 %v238_v39, %v237_v40 }
  0xb6   :  { %240 = vadd.xlane.f32.xlu1 %v239_v0 }
  0xe0   :  { %v192_v1 = vpop.xlane.xlu0 %191 }
  0xe1   :  { %v193_v44 = vrot.slane %v192_v1, 4 }
  0xe3   :  { %v194_v45 = vadd.f32 %v193_v44, %v192_v1 }
  0xe4   :  { %v277_v27 = vpop.xlane.xlu0 %276 }
  0xe5   :  { %v195_v49 = vrot.slane %v194_v45, 2  ;;  %v278_v34 = vrot.slane %v277_v27, 4 }
  0xe7   :  { %v196_v51 = vadd.f32 %v195_v49, %v194_v45  ;;  %v279_v53 = vadd.f32 %v278_v34, %v277_v27 }
  0xe9   :  { %v197_v2 = vrot.slane %v196_v51, 1  ;;  %v280_v28 = vrot.slane %v279_v53, 2 }
  0xeb   :  { %v198_v52 = vadd.f32 %v197_v2, %v196_v51  ;;  %v281_v41 = vadd.f32 %v280_v28, %v279_v53 }
  0xed   :  { %339 = vpush %v198_v52  ;;  %v282_v47 = vrot.slane %v281_v41, 1 }
  0xef   :  { %v283_v54 = vadd.f32 %v282_v47, %v281_v41 }
 0x11e   :  { %s340_s13 = spop %339 }
 0x11f   :  { %s200_s14 = smul.f32 %s340_s13, %s73_s3 }
 0x121   :  { %v201_v5 = vstv %s200_s14 }
 0x122   :  { %203 = vst [vmem:[%s550_s4] sm:$0xff] %v201_v5 }
 0x13f   :  { %v241_v35 = vpop.xlane.xlu1 %240 }
 0x140   :  { %v242_v42 = vrot.slane %v241_v35, 4 }
 0x142   :  { %v243_v36 = vadd.f32 %v242_v42, %v241_v35 }
 0x144   :  { %v244_v43 = vrot.slane %v243_v36, 2 }
 0x146   :  { %v245_v46 = vadd.f32 %v244_v43, %v243_v36 }
 0x148   :  { %v246_v48 = vrot.slane %v245_v46, 1 }
 0x14a   :  { %v247_v50 = vadd.f32 %v246_v48, %v245_v46 }
 0x14c   :  { %341 = vpush %v247_v50 }
 0x14d   :  { %343 = vpush %v283_v54 }
 0x17d   :  { %s342_s19 = spop %341 }
 0x17e   :  { %s286_s4 = smul.f32 %s342_s19, %s337_s17  ;;  %s344_s20 = spop %343 }
 0x17f   :  { %s287_s21 = smul.f32 %s344_s20, %s338_s18 }
 0x181   :  { %s288_s22 = sadd.f32 %s287_s21, %s286_s4 }
 0x183   :  { %v289_v55 = vstv %s288_s22 }
 0x184   :  { %291 = vst [vmem:[%s551_s5] sm:$0xff] %v289_v55 }
 0x185   :  { %334 = vsyncpa [#allocation4], 1 }
 0x186   :  { %335 = vsyncpa [#allocation8], 1 }
 0x187   :  { %336 = vsyncpa [#allocation5], 1 }

</bundles_post_ra>
